<compile_context>
chip_gen: v5e
topology: v5e:2x2
jax: 0.10.0
libtpu: 0.0.40
codegen_flags: <defaults>
</compile_context>

<pallas_src>
import functools

import jax
import jax.numpy as jnp
from jax.experimental import pallas as pl
from jax.experimental.pallas import tpu as pltpu


def _round_up(n: int, m: int) -> int:
    return ((n + m - 1) // m) * m


def _cdiv(a: int, b: int) -> int:
    return -(-a // b)


def _sublane(dtype) -> int:
    # Minimum second-to-last tile dim by element width (f32: 8, bf16: 16, int8/fp8: 32).
    return {1: 32, 2: 16, 4: 8}.get(jnp.dtype(dtype).itemsize, 8)


def _vmem_budget_bytes() -> int:
    """Usable VMEM: physical capacity minus headroom for Mosaic internal scratch / semaphores."""
    try:
        cap = int(pltpu.get_tpu_info().vmem_capacity_bytes)
    except Exception:  # non-TPU backend / interpret mode: assume the small (v7x) 64 MiB budget
        cap = 64 << 20
    return cap - max(8 << 20, cap // 8)  # 64 MiB -> 56 MiB, 128 MiB -> 112 MiB


# --------------------------------------------------------------------------------------------
# Kernels
# --------------------------------------------------------------------------------------------
def _resident_kernel(x_ref, w1t_ref, w2t_ref, o_ref):
    # x: [tb, d_p]   w1t: [d_p, d_p]   w2t: [d_p, p_p]   o: [tb, p_p]
    x = x_ref[...]
    h = jnp.dot(x, w1t_ref[...], preferred_element_type=jnp.float32)
    h = jnp.maximum(h, 0.0).astype(x.dtype)  # f32 ReLU on the f32 accumulator (cheap on all gens)
    o_ref[...] = jnp.dot(h, w2t_ref[...], preferred_element_type=jnp.float32).astype(o_ref.dtype)


def _ktiled_kernel(x_ref, w1t_ref, w2t_ref, o_ref, acc_ref):
    # grid = (batch tiles, hidden tiles). The hidden axis tiles w1t's columns / w2t's rows, i.e.
    # the reduction dim of the 2nd matmul; the 1st matmul's reduction (d_in) stays whole, so the
    # ReLU per hidden tile is exact.
    k = pl.program_id(1)

    @pl.when(k == 0)
    def _():
        acc_ref[...] = jnp.zeros_like(acc_ref)

    x = x_ref[...]
    h = jnp.dot(x, w1t_ref[...], preferred_element_type=jnp.float32)      # [tb, tk]
    h = jnp.maximum(h, 0.0).astype(x.dtype)
    acc_ref[...] += jnp.dot(h, w2t_ref[...], preferred_element_type=jnp.float32)

    @pl.when(k == pl.num_programs(1) - 1)
    def _():
        o_ref[...] = acc_ref[...].astype(o_ref.dtype)


# --------------------------------------------------------------------------------------------
# One-time parameter preparation (hoisted out of the per-call hot path)
# --------------------------------------------------------------------------------------------
def prepare_projection_head_weights(w1, w2, compute_dtype=None):
    """Transpose PyTorch [out, in] weights to [in, out], pad feature dims to the 128-lane width
    and optionally cast to the MXU compute dtype. Call ONCE; reuse the result across calls."""
    d_in = w1.shape[1]
    proj_dim = w2.shape[0]
    assert w1.shape == (d_in, d_in) and w2.shape == (proj_dim, d_in)

    w1t = w1.T  # [d_in, d_in]
    w2t = w2.T  # [d_in, proj_dim]
    if compute_dtype is not None:
        w1t = w1t.astype(compute_dtype)
        w2t = w2t.astype(compute_dtype)

    d_p = _round_up(d_in, 128)
    p_p = _round_up(proj_dim, 128)
    if d_p != d_in:
        w1t = jnp.pad(w1t, ((0, d_p - d_in), (0, d_p - d_in)))
        w2t = jnp.pad(w2t, ((0, d_p - d_in), (0, 0)))
    if p_p != proj_dim:
        w2t = jnp.pad(w2t, ((0, 0), (0, p_p - proj_dim)))
    return w1t, w2t, d_in, proj_dim


# --------------------------------------------------------------------------------------------
# Forward pass on prepared weights
# --------------------------------------------------------------------------------------------
@functools.partial(jax.jit, static_argnames=("d_in", "proj_dim", "block_b", "compute_dtype"))
def projection_head_apply(x, w1t_p, w2t_p, *, d_in, proj_dim, block_b=None, compute_dtype=None):
    """y = relu(x @ W1^T) @ W2^T on pre-transposed / pre-padded weights."""
    B = x.shape[0]
    assert x.shape == (B, d_in)
    out_dtype = x.dtype

    cdtype = jnp.dtype(compute_dtype) if compute_dtype is not None else jnp.dtype(x.dtype)
    if x.dtype != cdtype:
        x = x.astype(cdtype)
    assert w1t_p.dtype == cdtype and w2t_p.dtype == cdtype, "prepare weights with same compute_dtype"

    d_p, p_p = w1t_p.shape[0], w2t_p.shape[1]
    itemsize = cdtype.itemsize
    sublane = _sublane(cdtype)
    budget = _vmem_budget_bytes()

    # Larger batch tiles on big-VMEM chips (v5e/v6e), smaller on v7x (64 MiB / TC).
    if block_b is None:
        block_b = 512 if budget >= (96 << 20) else 256

    # ---- batch tile: dtype-aware sublane rounding, padding bounded to < one sublane group ----
    nb = max(1, _cdiv(B, block_b))
    tb = _round_up(_cdiv(B, nb), sublane)

    # ---- resident vs K-tiled weights, and resident weight buffer depth ----
    w_resident = itemsize * (d_p * d_p + d_p * p_p)
    use_ktiled = w_resident > (budget * 2) // 3  # weights too big to keep resident in VMEM
    # Single-buffer the constant-index weights once the extra buffer costs real VMEM; tiny
    # weights keep the default double buffer (costs nothing, simplest pipeline).
    weight_buffers = 1 if (not use_ktiled and w_resident > (4 << 20)) else 2

    tk = 512 if d_p % 512 == 0 else (256 if d_p % 256 == 0 else 128)

    def footprint(tb_):
        io = itemsize * 2 * tb_ * (d_p + p_p)  # double-buffered x / out tiles
        if use_ktiled:
            return io + itemsize * 2 * tk * (d_p + p_p) + 4 * tb_ * p_p  # w tiles + f32 acc
        return io + weight_buffers * w_resident + 4 * tb_ * d_p          # resident w + f32 h

    while footprint(tb) > budget and tb > sublane:
        tb = max(sublane, _round_up(tb // 2, sublane))

    b_p = _round_up(B, tb)
    if b_p != B or d_p != d_in:
        x = jnp.pad(x, ((0, b_p - B), (0, d_p - d_in)))

    vmem_limit = int(min(max(footprint(tb) + (4 << 20), 32 << 20), budget))

    cost = pl.CostEstimate(
        flops=2 * b_p * d_p * (d_p + p_p),
        transcendentals=0,
        bytes_accessed=itemsize * (b_p * d_p + d_p * d_p + d_p * p_p) + 4 * b_p * p_p,
    )

    if not use_ktiled:
        if weight_buffers == 1:
            w1_spec = pl.BlockSpec((d_p, d_p), lambda i: (0, 0), pipeline_mode=pl.Buffered(1))
            w2_spec = pl.BlockSpec((d_p, p_p), lambda i: (0, 0), pipeline_mode=pl.Buffered(1))
        else:
            w1_spec = pl.BlockSpec((d_p, d_p), lambda i: (0, 0))
            w2_spec = pl.BlockSpec((d_p, p_p), lambda i: (0, 0))
        grid_spec = pltpu.PrefetchScalarGridSpec(
            num_scalar_prefetch=0,
            grid=(b_p // tb,),
            in_specs=[
                pl.BlockSpec((tb, d_p), lambda i: (i, 0)),  # x tile: pipelined over batch
                w1_spec,                                     # resident weights (DMA'd once)
                w2_spec,
            ],
            out_specs=pl.BlockSpec((tb, p_p), lambda i: (i, 0)),
            scratch_shapes=[],
        )
        kernel = _resident_kernel
        # TODO(synk): if a v7x trace shows one TensorCore idle, switch this axis to
        # pltpu.CORE_PARALLEL (or an explicit core_map) to force the split across both TCs.
        dims = ("parallel",)
    else:
        grid_spec = pltpu.PrefetchScalarGridSpec(
            num_scalar_prefetch=0,
            grid=(b_p // tb, d_p // tk),
            in_specs=[
                pl.BlockSpec((tb, d_p), lambda i, k: (i, 0)),  # x tile: constant over k
                pl.BlockSpec((d_p, tk), lambda i, k: (0, k)),  # w1t columns (hidden tile)
                pl.BlockSpec((tk, p_p), lambda i, k: (k, 0)),  # w2t rows   (hidden tile)
            ],
            out_specs=pl.BlockSpec((tb, p_p), lambda i, k: (i, 0)),
            scratch_shapes=[pltpu.VMEM((tb, p_p), jnp.float32)],
        )
        kernel = _ktiled_kernel
        dims = ("parallel", "arbitrary")

    out = pl.pallas_call(
        kernel,
        out_shape=jax.ShapeDtypeStruct((b_p, p_p), out_dtype),
        grid_spec=grid_spec,
        compiler_params=pltpu.CompilerParams(
            dimension_semantics=dims,
            vmem_limit_bytes=vmem_limit,
        ),
        cost_estimate=cost,
    )(x, w1t_p, w2t_p)

    # Padded rows/cols are exact zeros and contribute nothing; slice them off.
    return out[:B, :proj_dim]


def projection_head(x, w1, w2, *, block_b=None, compute_dtype=None):
    """One-shot convenience wrapper (preps weights per call). For repeated calls, prepare the
    weights once with prepare_projection_head_weights() and call projection_head_apply()."""
    w1t_p, w2t_p, d_in, proj_dim = prepare_projection_head_weights(w1, w2, compute_dtype)
    return projection_head_apply(x, w1t_p, w2t_p, d_in=d_in, proj_dim=proj_dim,
                                 block_b=block_b, compute_dtype=compute_dtype)


if __name__ == "__main__":
    key = jax.random.PRNGKey(0)
    k_x, k_w1, k_w2 = jax.random.split(key, 3)

    B = 8          # batch
    d_in = 32      # input feature dim
    proj_dim = 64  # projection_dim (module default)

    x = jax.random.normal(k_x, (B, d_in), dtype=jnp.float32)
    # nn.Linear weights: [out_features, in_features]
    w1 = jax.random.normal(k_w1, (d_in, d_in), dtype=jnp.float32) * 0.1
    w2 = jax.random.normal(k_w2, (proj_dim, d_in), dtype=jnp.float32) * 0.1

    # Weight prep (transpose + pad) happens ONCE, outside the per-call hot path.
    w1t_p, w2t_p, d_in_, proj_dim_ = prepare_projection_head_weights(w1, w2)
    out = projection_head_apply(x, w1t_p, w2t_p, d_in=d_in_, proj_dim=proj_dim_)
    jax.block_until_ready(out)

    # Cross-check against pure-JAX reference (kernel matmul precision is MXU default; see notes).
    ref = jnp.maximum(x @ w1.T, 0.0) @ w2.T
    assert out.shape == (B, proj_dim)
    assert jnp.allclose(out, ref, atol=1e-5, rtol=1e-5)

    # bf16 MXU-operand path (f32 accumulation + f32 ReLU inside the kernel), loose tolerance.
    w1t_b, w2t_b, _, _ = prepare_projection_head_weights(w1, w2, compute_dtype=jnp.bfloat16)
    out_b = projection_head_apply(x, w1t_b, w2t_b, d_in=d_in_, proj_dim=proj_dim_,
                                  compute_dtype=jnp.bfloat16)
    jax.block_until_ready(out_b)
    assert out_b.shape == (B, proj_dim)
    assert jnp.allclose(out_b.astype(jnp.float32), ref, atol=1e-1, rtol=1e-1)

    print("KERNEL_OK")
</pallas_src>

<mosaic_0001>
module attributes {stable_mosaic.version = 11 : i64} {
  func.func @_resident_kernel(%arg0: i32, %arg1: memref<8x128xf32, #tpu.memory_space<vmem>>, %arg2: memref<128x128xf32, #tpu.memory_space<vmem>>, %arg3: memref<128x128xf32, #tpu.memory_space<vmem>>, %arg4: memref<8x128xf32, #tpu.memory_space<vmem>>) attributes {dimension_semantics = [#tpu.dimension_semantics<parallel>], iteration_bounds = array<i64: 1>, scalar_prefetch = 0 : i64, scratch_operands = 0 : i64, tpu.core_type = #tpu.core_type<tc>, window_params = [{transform_indices = @transform_0, window_bounds = array<i64: 8, 128>}, {pipeline_mode = #tpu.pipeline_mode<synchronous>, transform_indices = @transform_1, window_bounds = array<i64: 128, 128>}, {pipeline_mode = #tpu.pipeline_mode<synchronous>, transform_indices = @transform_2, window_bounds = array<i64: 128, 128>}, {transform_indices = @transform_3, window_bounds = array<i64: 8, 128>}]} {
    %c0 = arith.constant 0 : index
    %c0_0 = arith.constant 0 : index
    %0 = vector.load %arg1[%c0, %c0_0] : memref<8x128xf32, #tpu.memory_space<vmem>>, vector<8x128xf32>
    %c0_1 = arith.constant 0 : index
    %c0_2 = arith.constant 0 : index
    %1 = vector.load %arg2[%c0_1, %c0_2] : memref<128x128xf32, #tpu.memory_space<vmem>>, vector<128x128xf32>
    %cst = arith.constant dense<0.000000e+00> : vector<8x128xf32>
    %2 = tpu.matmul %0, %1, %cst {dimension_numbers = #tpu.dot_dimension_numbers<[1], [0], [0], [1], [0, 0, 1, 1], [], []>} : vector<8x128xf32>, vector<128x128xf32>, vector<8x128xf32> -> vector<8x128xf32>
    %cst_3 = arith.constant 0.000000e+00 : f32
    %3 = vector.broadcast %cst_3 : f32 to vector<8x128xf32>
    %4 = arith.maximumf %2, %3 : vector<8x128xf32>
    %c0_4 = arith.constant 0 : index
    %c0_5 = arith.constant 0 : index
    %5 = vector.load %arg3[%c0_4, %c0_5] : memref<128x128xf32, #tpu.memory_space<vmem>>, vector<128x128xf32>
    %cst_6 = arith.constant dense<0.000000e+00> : vector<8x128xf32>
    %6 = tpu.matmul %4, %5, %cst_6 {dimension_numbers = #tpu.dot_dimension_numbers<[1], [0], [0], [1], [0, 0, 1, 1], [], []>} : vector<8x128xf32>, vector<128x128xf32>, vector<8x128xf32> -> vector<8x128xf32>
    %c0_7 = arith.constant 0 : index
    %c0_8 = arith.constant 0 : index
    %7 = vector.load %arg4[%c0_7, %c0_8] : memref<8x128xf32, #tpu.memory_space<vmem>>, vector<8x128xf32>
    tpu.vector_store %arg4[%c0_7, %c0_8], %6 {strides = array<i32>} : memref<8x128xf32, #tpu.memory_space<vmem>>, vector<8x128xf32>,
    return
  }
  func.func @transform_0(%arg0: i32) -> (i32, i32) {
    %c0_i32 = arith.constant 0 : i32
    %c0_i32_0 = arith.constant 0 : i32
    return %arg0, %c0_i32 : i32, i32
  }
  func.func @transform_1(%arg0: i32) -> (i32, i32) {
    %c0_i32 = arith.constant 0 : i32
    %c0_i32_0 = arith.constant 0 : i32
    %c0_i32_1 = arith.constant 0 : i32
    return %c0_i32, %c0_i32_0 : i32, i32
  }
  func.func @transform_2(%arg0: i32) -> (i32, i32) {
    %c0_i32 = arith.constant 0 : i32
    %c0_i32_0 = arith.constant 0 : i32
    %c0_i32_1 = arith.constant 0 : i32
    return %c0_i32, %c0_i32_0 : i32, i32
  }
  func.func @transform_3(%arg0: i32) -> (i32, i32) {
    %c0_i32 = arith.constant 0 : i32
    %c0_i32_0 = arith.constant 0 : i32
    return %arg0, %c0_i32 : i32, i32
  }
}

</mosaic_0001>

<bundles_post_ra>
// kernel: projection_head_apply.1
= control target key start
LH: loop header
LB: loop body
LE: loop exit
PB: predicated region body
PF: predicated region fallthrough
CT: control target
= control target key end

     0   :  { %8 = vsyncpa [#allocation3], 0  ;;  %s260_s0 = inlined_call_operand.vmem [shape: f32[8,128], index: 0, kind: input, shape index: {}]   ;;  %s261_s1 = inlined_call_operand.hbm [shape: f32[128,128], index: 1, kind: input, shape index: {}]   ;;  %s262_s2 = inlined_call_operand.hbm [shape: f32[128,128], index: 2, kind: input, shape index: {}]   ;;  %s263_s3 = inlined_call_operand.hbm [shape: f32[8,128], index: 3, kind: output, shape index: {}]  }
   0x1   :  { %9 = vsyncpa [#allocation6], 0 }
   0x2   :  { %10 = vsyncpa [#allocation4], 0  ;;  %s17_s14 = sshll.u32 %s261_s1, 4  ;;  %s223_s15 = smov [#allocation2]   ;;  %s18_s14 = int_to_ptr.hbm [resolvable:$true] %s17_s14 }
   0x3   :  { %s19_s16 = sshll.u32 %s223_s15, 4  ;;  %s30_s19 = sshll.u32 %s262_s2, 4  ;;  %s20_s16 = int_to_ptr.vmem [resolvable:$true] %s19_s16  ;;  %s31_s19 = int_to_ptr.hbm [resolvable:$true] %s30_s19 }
   0x4   :  { %s224_s20 = smov 128   ;;  %s225_s21 = smov 8  }
   0x5   :  { %25 = dma.hbm_to_vmem [thread:$0]  %s18_s14, 2048, %s20_s16, [#allocation3], %s224_s20, %s224_s20, %s225_s21  }
   0x6   :  { %s226_s22 = smov [#allocation5]  }
   0x7   :  { %s32_s23 = sshll.u32 %s226_s22, 4  ;;  %s33_s23 = int_to_ptr.vmem [resolvable:$true] %s32_s23 }
   0x8   :  { %38 = dma.hbm_to_vmem [thread:$0]  %s31_s19, 2048, %s33_s23, [#allocation6], %s224_s20, %s224_s20, %s225_s21  }
   0x9   :  { %217 = dma.done.wait [#allocation3], 2048  }
   0xa   :  { %218 = vsyncadd [#allocation3], 4294965248 }
   0xb   :  { %219 = dma.done.wait [#allocation6], 2048  }
   0xc   :  { %220 = vsyncadd [#allocation6], 4294965248  ;;  %v63_v0 = vld [vmem:[#allocation2 + $0x78] sm:$0xff]  ;;  %v62_v1 = vld [vmem:[#allocation2 + $0x70] sm:$0xff]  ;;  %s227_s24 = smov [#allocation7]   ;;  %s129_s28 = sshll.u32 %s263_s3, 4  ;;  %s130_s28 = int_to_ptr.hbm [resolvable:$true] %s129_s28 }
   0xd   :  { %64 = vmatpush.msra.mxu0 %v63_v0  ;;  %v61_v2 = vld [vmem:[#allocation2 + $0x68] sm:$0xff]  ;;  %v60_v3 = vld [vmem:[#allocation2 + $0x60] sm:$0xff]  ;;  %v100_v4 = vld [vmem:[#allocation5 + $0x78] sm:$0xff]  ;;  %s127_s25 = sshll.u32 %s227_s24, 4  ;;  %s128_s25 = int_to_ptr.vmem [resolvable:$true] %s127_s25 }
   0xe   :  { %v59_v5 = vld [vmem:[#allocation2 + $0x58] sm:$0xff]  ;;  %101 = vmatpush.msra.mxu1 %v100_v4  ;;  %v99_v6 = vld [vmem:[#allocation5 + $0x70] sm:$0xff]  ;;  %v98_v7 = vld [vmem:[#allocation5 + $0x68] sm:$0xff] }
   0xf   :  { %65 = vmatpush.msra.mxu0 %v62_v1  ;;  %v58_v8 = vld [vmem:[#allocation2 + $0x50] sm:$0xff]  ;;  %v97_v9 = vld [vmem:[#allocation5 + $0x60] sm:$0xff]  ;;  %v57_v10 = vld [vmem:[#allocation2 + $0x48] sm:$0xff] }
  0x10   :  { %102 = vmatpush.msra.mxu1 %v99_v6  ;;  %v96_v11 = vld [vmem:[#allocation5 + $0x58] sm:$0xff]  ;;  %v56_v12 = vld [vmem:[#allocation2 + $0x40] sm:$0xff]  ;;  %v95_v13 = vld [vmem:[#allocation5 + $0x50] sm:$0xff] }
  0x11   :  { %66 = vmatpush.msra.mxu0 %v61_v2  ;;  %v55_v14 = vld [vmem:[#allocation2 + $0x38] sm:$0xff]  ;;  %v94_v15 = vld [vmem:[#allocation5 + $0x48] sm:$0xff]  ;;  %v54_v16 = vld [vmem:[#allocation2 + $0x30] sm:$0xff] }
  0x12   :  { %103 = vmatpush.msra.mxu1 %v98_v7  ;;  %v93_v17 = vld [vmem:[#allocation5 + $0x40] sm:$0xff]  ;;  %v53_v18 = vld [vmem:[#allocation2 + $0x28] sm:$0xff]  ;;  %v92_v19 = vld [vmem:[#allocation5 + $0x38] sm:$0xff] }
  0x13   :  { %67 = vmatpush.msra.mxu0 %v60_v3  ;;  %v52_v20 = vld [vmem:[#allocation2 + $0x20] sm:$0xff]  ;;  %v91_v21 = vld [vmem:[#allocation5 + $0x30] sm:$0xff]  ;;  %v51_v22 = vld [vmem:[#allocation2 + $0x18] sm:$0xff] }
  0x14   :  { %104 = vmatpush.msra.mxu1 %v97_v9  ;;  %v90_v23 = vld [vmem:[#allocation5 + $0x28] sm:$0xff]  ;;  %v50_v24 = vld [vmem:[#allocation2 + $0x10] sm:$0xff]  ;;  %v89_v25 = vld [vmem:[#allocation5 + $0x20] sm:$0xff] }
  0x15   :  { %68 = vmatpush.msra.mxu0 %v59_v5  ;;  %v49_v26 = vld [vmem:[#allocation2 + $0x8] sm:$0xff]  ;;  %v88_v27 = vld [vmem:[#allocation5 + $0x18] sm:$0xff]  ;;  %v48_v28 = vld [vmem:[#allocation2] sm:$0xff] }
  0x16   :  { %105 = vmatpush.msra.mxu1 %v96_v11  ;;  %v47_v29 = vld [vmem:[%s260_s0] sm:$0xff]  ;;  %v87_v30 = vld [vmem:[#allocation5 + $0x10] sm:$0xff]  ;;  %v86_v31 = vld [vmem:[#allocation5 + $0x8] sm:$0xff] }
  0x17   :  { %69 = vmatpush.msra.mxu0 %v58_v8  ;;  %v85_v32 = vld [vmem:[#allocation5] sm:$0xff] }
  0x18   :  { %106 = vmatpush.msra.mxu1 %v95_v13 }
  0x19   :  { %70 = vmatpush.msra.mxu0 %v57_v10 }
  0x1a   :  { %107 = vmatpush.msra.mxu1 %v94_v15 }
  0x1b   :  { %71 = vmatpush.msra.mxu0 %v56_v12 }
  0x1c   :  { %108 = vmatpush.msra.mxu1 %v93_v17 }
  0x1d   :  { %72 = vmatpush.msra.mxu0 %v55_v14 }
  0x1e   :  { %109 = vmatpush.msra.mxu1 %v92_v19 }
  0x1f   :  { %73 = vmatpush.msra.mxu0 %v54_v16 }
  0x20   :  { %110 = vmatpush.msra.mxu1 %v91_v21 }
  0x21   :  { %74 = vmatpush.msra.mxu0 %v53_v18 }
  0x22   :  { %111 = vmatpush.msra.mxu1 %v90_v23 }
  0x23   :  { %75 = vmatpush.msra.mxu0 %v52_v20 }
  0x24   :  { %112 = vmatpush.msra.mxu1 %v89_v25 }
  0x25   :  { %76 = vmatpush.msra.mxu0 %v51_v22 }
  0x26   :  { %113 = vmatpush.msra.mxu1 %v88_v27 }
  0x27   :  { %77 = vmatpush.msra.mxu0 %v50_v24 }
  0x28   :  { %114 = vmatpush.msra.mxu1 %v87_v30 }
  0x29   :  { %78 = vmatpush.msra.mxu0 %v49_v26 }
  0x2a   :  { %115 = vmatpush.msra.mxu1 %v86_v31 }
  0x2b   :  { %79 = vmatpush.msra.mxu0 %v48_v28 }
  0x2c   :  { %80 = vmatmul.f32.vlgmr.msra.gmra.mxu0 %v47_v29  ;;  %116 = vmatpush.msra.mxu1 %v85_v32 }
  0xa9   :  { %v81_v33 = vpop.f32.mrf.mxu0 }
  0xaa   :  { %v84_v34 = vmax.f32 %v81_v33, 0.0 }
  0xac   :  { %117 = vmatmul.f32.vlgmr.msra.gmra.mxu1 %v84_v34 }
 0x129   :  { %v118_v35 = vpop.f32.mrf.mxu1 }
 0x12a   :  { %121 = vst [vmem:[#allocation7] sm:$0xff] %v118_v35 }
 0x12b   :  { %132 = dma.vmem_to_hbm [thread:$0]  %s128_s25, 128, %s130_s28, [#allocation4]  }
 0x12c   :  { %221 = dma.done.wait [#allocation4], 128  }
 0x12d   :  { %222 = vsyncadd [#allocation4], 4294967168 }
 0x12e   :  { %137 = vsyncpa [#allocation3], 1 }
 0x12f   :  { %138 = vsyncpa [#allocation6], 1 }
 0x130   :  { %139 = vsyncpa [#allocation4], 1 }

</bundles_post_ra>
